<compile_context>
chip_gen: v6e
topology: v6e:2x2x1
jax: 0.10.0
libtpu: 0.0.40
codegen_flags: <defaults>
</compile_context>

<pallas_src>
import jax
import jax.numpy as jnp
from jax.experimental import pallas as pl
from jax.experimental.pallas import tpu as pltpu

BN_EPS = 1e-5
_VMEM_LIMIT = 32 * 1024 * 1024   # safe on v5e/v6e/v7x; tiles below are sized well under this
_LANE_TILE_CAP = 2048            # max lanes per spatial tile (multiple of 128)
_SMALL_CIN = 16                  # below this, use the VPU path instead of the MXU


def _conv1x1(w, x):
    """1x1 conv on a channel-major tile: w (Cout, Cin) x (Cin, L) -> (Cout, L) float32.

    For tiny channel counts a (Cout, Cin) matmul would use <1% of the MXU, so unroll
    into Cin broadcast multiply-adds on the VPU with the lane dim (L) fully dense.
    """
    cout, cin = w.shape
    if cin <= _SMALL_CIN:
        wf = w.astype(jnp.float32)
        xf = x.astype(jnp.float32)
        y = wf[:, 0:1] * xf[0:1, :]
        for c in range(1, cin):
            y = y + wf[:, c:c + 1] * xf[c:c + 1, :]
        return y
    return jnp.dot(w, x, preferred_element_type=jnp.float32)


def _stats_kernel(x_ref, w_ref, psum_ref, psumsq_ref):
    # x_ref: (1, Cin, TL), w_ref: (Cout, Cin)
    y = _conv1x1(w_ref[...], x_ref[0, :, :])                       # (Cout, TL) f32
    psum_ref[0, 0, :, :] = jnp.sum(y, axis=-1, keepdims=True)      # (Cout, 1)
    psumsq_ref[0, 0, :, :] = jnp.sum(y * y, axis=-1, keepdims=True)


def _norm_kernel(x_ref, w_ref, scale_ref, shift_ref, o_ref):
    # x_ref: (1, Cin, TL); scale/shift: (Cout, 1); o_ref: (1, Cout, TL)
    y = _conv1x1(w_ref[...], x_ref[0, :, :])                       # (Cout, TL) f32
    z = y * scale_ref[...] + shift_ref[...]                        # folded BN affine
    o_ref[0, :, :] = jnp.maximum(z, 0.0).astype(o_ref.dtype)       # ReLU


def _choose_lane_tile(hw):
    """Largest multiple of 128 that divides hw (capped); full width if hw not 128-aligned."""
    if hw % 128 != 0:
        return hw
    tl = min(hw, _LANE_TILE_CAP)
    while hw % tl != 0:
        tl -= 128
    return tl


def conv_layer_forward(x_nchw, conv_w, conv_b, bn_gamma, bn_beta):
    """Forward of ConvLayer: Conv2d(1x1) -> BatchNorm2d (training batch stats) -> ReLU."""
    del conv_b  # cancels exactly under training-mode BN mean subtraction
    N, Cin, H, W = x_nchw.shape
    Cout = conv_w.shape[0]
    HW = H * W

    x3 = x_nchw.reshape(N, Cin, HW)          # free reshape, stays NCHW-native
    w2 = conv_w.reshape(Cout, Cin)

    TL = _choose_lane_tile(HW)
    nl = HW // TL

    cparams = pltpu.CompilerParams(
        dimension_semantics=("parallel", "parallel"),
        vmem_limit_bytes=_VMEM_LIMIT,
    )

    # -------- Pass 1: per-tile partial sums of y and y^2 (per output channel) --------
    psum, psumsq = pl.pallas_call(
        _stats_kernel,
        out_shape=(
            jax.ShapeDtypeStruct((N, nl, Cout, 1), jnp.float32),
            jax.ShapeDtypeStruct((N, nl, Cout, 1), jnp.float32),
        ),
        grid=(N, nl),
        in_specs=[
            pl.BlockSpec((1, Cin, TL), lambda n, l: (n, 0, l)),
            pl.BlockSpec((Cout, Cin), lambda n, l: (0, 0)),
        ],
        out_specs=(
            pl.BlockSpec((1, 1, Cout, 1), lambda n, l: (n, l, 0, 0)),
            pl.BlockSpec((1, 1, Cout, 1), lambda n, l: (n, l, 0, 0)),
        ),
        compiler_params=cparams,
    )(x3, w2)

    # Tiny O(Cout) cross-tile reduction + BN folding (stays in XLA, negligible).
    count = jnp.float32(N * HW)
    s1 = jnp.sum(psum, axis=(0, 1)).reshape(Cout)
    s2 = jnp.sum(psumsq, axis=(0, 1)).reshape(Cout)
    mean = s1 / count
    var = jnp.maximum(s2 / count - mean * mean, 0.0)   # biased (training-mode) variance
    scale = bn_gamma.astype(jnp.float32) * jax.lax.rsqrt(var + BN_EPS)
    shift = bn_beta.astype(jnp.float32) - mean * scale
    scale2 = scale.reshape(Cout, 1)
    shift2 = shift.reshape(Cout, 1)

    # -------- Pass 2: recompute cheap conv per tile, apply folded BN + ReLU --------
    out3 = pl.pallas_call(
        _norm_kernel,
        out_shape=jax.ShapeDtypeStruct((N, Cout, HW), x_nchw.dtype),
        grid=(N, nl),
        in_specs=[
            pl.BlockSpec((1, Cin, TL), lambda n, l: (n, 0, l)),
            pl.BlockSpec((Cout, Cin), lambda n, l: (0, 0)),
            pl.BlockSpec((Cout, 1), lambda n, l: (0, 0)),
            pl.BlockSpec((Cout, 1), lambda n, l: (0, 0)),
        ],
        out_specs=pl.BlockSpec((1, Cout, TL), lambda n, l: (n, 0, l)),
        compiler_params=cparams,
    )(x3, w2, scale2, shift2)

    return out3.reshape(N, Cout, H, W)


def reference_forward(x_nchw, conv_w, conv_b, bn_gamma, bn_beta):
    """Pure-JAX reference replicating PyTorch Conv2d(1x1, bias)+BatchNorm2d(train)+ReLU."""
    N, Cin, H, W = x_nchw.shape
    Cout = conv_w.shape[0]
    y = jnp.einsum("nchw,oc->nohw", x_nchw, conv_w.reshape(Cout, Cin)) + conv_b[None, :, None, None]
    mean = jnp.mean(y, axis=(0, 2, 3), keepdims=True)
    var = jnp.mean((y - mean) ** 2, axis=(0, 2, 3), keepdims=True)
    y_hat = (y - mean) / jnp.sqrt(var + BN_EPS)
    y_hat = y_hat * bn_gamma[None, :, None, None] + bn_beta[None, :, None, None]
    return jnp.maximum(y_hat, 0.0)


if __name__ == "__main__":
    key = jax.random.PRNGKey(0)
    k_x, k_w, k_b, k_g, k_be = jax.random.split(key, 5)

    N, Cin, Cout, H, W = 2, 4, 8, 16, 16

    x = jax.random.normal(k_x, (N, Cin, H, W), dtype=jnp.float32)
    conv_w = jax.random.normal(k_w, (Cout, Cin, 1, 1), dtype=jnp.float32) * 0.1
    conv_b = jax.random.normal(k_b, (Cout,), dtype=jnp.float32) * 0.1
    bn_gamma = 1.0 + 0.1 * jax.random.normal(k_g, (Cout,), dtype=jnp.float32)
    bn_beta = 0.1 * jax.random.normal(k_be, (Cout,), dtype=jnp.float32)

    out = conv_layer_forward(x, conv_w, conv_b, bn_gamma, bn_beta)
    out = jax.block_until_ready(out)

    ref = reference_forward(x, conv_w, conv_b, bn_gamma, bn_beta)
    assert out.shape == (N, Cout, H, W)
    assert jnp.allclose(out, ref, atol=1e-4, rtol=1e-4), "mismatch vs reference"

    # TODO(synk): BatchNorm2d running_mean/running_var buffer updates (training side
    # effect) are not modeled; they do not affect this forward output.
    print("KERNEL_OK")
</pallas_src>

<mosaic_0001>
module attributes {stable_mosaic.version = 11 : i64} {
  func.func @_stats_kernel(%arg0: i32, %arg1: i32, %arg2: memref<1x4x256xf32, #tpu.memory_space<vmem>>, %arg3: memref<8x4xf32, #tpu.memory_space<vmem>>, %arg4: memref<1x1x8x1xf32, #tpu.memory_space<vmem>>, %arg5: memref<1x1x8x1xf32, #tpu.memory_space<vmem>>) attributes {dimension_semantics = [#tpu.dimension_semantics<parallel>, #tpu.dimension_semantics<parallel>], iteration_bounds = array<i64: 2, 1>, scalar_prefetch = 0 : i64, scratch_operands = 0 : i64, tpu.core_type = #tpu.core_type<tc>, window_params = [{transform_indices = @transform_0, window_bounds = array<i64: 1, 4, 256>}, {pipeline_mode = #tpu.pipeline_mode<synchronous>, transform_indices = @transform_1, window_bounds = array<i64: 8, 4>}, {transform_indices = @transform_2, window_bounds = array<i64: 1, 1, 8, 1>}, {transform_indices = @transform_3, window_bounds = array<i64: 1, 1, 8, 1>}]} {
    %c0 = arith.constant 0 : index
    %c0_0 = arith.constant 0 : index
    %0 = vector.load %arg3[%c0, %c0_0] : memref<8x4xf32, #tpu.memory_space<vmem>>, vector<8x4xf32>
    %c0_1 = arith.constant 0 : index
    %c0_2 = arith.constant 0 : index
    %c0_3 = arith.constant 0 : index
    %1 = vector.load %arg2[%c0_1, %c0_2, %c0_3] : memref<1x4x256xf32, #tpu.memory_space<vmem>>, vector<1x4x256xf32>
    %2 = vector.shape_cast %1 : vector<1x4x256xf32> to vector<4x256xf32>
    %3 = vector.extract_strided_slice %0 {offsets = [0, 0], sizes = [8, 1], strides = [1, 1]} : vector<8x4xf32> to vector<8x1xf32>
    %4 = vector.extract_strided_slice %2 {offsets = [0, 0], sizes = [1, 256], strides = [1, 1]} : vector<4x256xf32> to vector<1x256xf32>
    %5 = vector.broadcast %3 : vector<8x1xf32> to vector<8x256xf32>
    %6 = vector.broadcast %4 : vector<1x256xf32> to vector<8x256xf32>
    %7 = arith.mulf %5, %6 : vector<8x256xf32>
    %8 = vector.extract_strided_slice %0 {offsets = [0, 1], sizes = [8, 1], strides = [1, 1]} : vector<8x4xf32> to vector<8x1xf32>
    %9 = vector.extract_strided_slice %2 {offsets = [1, 0], sizes = [1, 256], strides = [1, 1]} : vector<4x256xf32> to vector<1x256xf32>
    %10 = vector.broadcast %8 : vector<8x1xf32> to vector<8x256xf32>
    %11 = vector.broadcast %9 : vector<1x256xf32> to vector<8x256xf32>
    %12 = arith.mulf %10, %11 : vector<8x256xf32>
    %13 = arith.addf %7, %12 : vector<8x256xf32>
    %14 = vector.extract_strided_slice %0 {offsets = [0, 2], sizes = [8, 1], strides = [1, 1]} : vector<8x4xf32> to vector<8x1xf32>
    %15 = vector.extract_strided_slice %2 {offsets = [2, 0], sizes = [1, 256], strides = [1, 1]} : vector<4x256xf32> to vector<1x256xf32>
    %16 = vector.broadcast %14 : vector<8x1xf32> to vector<8x256xf32>
    %17 = vector.broadcast %15 : vector<1x256xf32> to vector<8x256xf32>
    %18 = arith.mulf %16, %17 : vector<8x256xf32>
    %19 = arith.addf %13, %18 : vector<8x256xf32>
    %20 = vector.extract_strided_slice %0 {offsets = [0, 3], sizes = [8, 1], strides = [1, 1]} : vector<8x4xf32> to vector<8x1xf32>
    %21 = vector.extract_strided_slice %2 {offsets = [3, 0], sizes = [1, 256], strides = [1, 1]} : vector<4x256xf32> to vector<1x256xf32>
    %22 = vector.broadcast %20 : vector<8x1xf32> to vector<8x256xf32>
    %23 = vector.broadcast %21 : vector<1x256xf32> to vector<8x256xf32>
    %24 = arith.mulf %22, %23 : vector<8x256xf32>
    %25 = arith.addf %19, %24 : vector<8x256xf32>
    %cst = arith.constant dense<0.000000e+00> : vector<8xf32>
    %26 = vector.multi_reduction <add>, %25, %cst [1] : vector<8x256xf32> to vector<8xf32>
    %27 = vector.shape_cast %26 : vector<8xf32> to vector<8x1xf32>
    %c0_4 = arith.constant 0 : index
    %c0_5 = arith.constant 0 : index
    %c0_6 = arith.constant 0 : index
    %c0_7 = arith.constant 0 : index
    %28 = vector.load %arg4[%c0_4, %c0_5, %c0_6, %c0_7] : memref<1x1x8x1xf32, #tpu.memory_space<vmem>>, vector<1x1x8x1xf32>
    %29 = vector.shape_cast %28 : vector<1x1x8x1xf32> to vector<8x1xf32>
    %30 = vector.shape_cast %27 : vector<8x1xf32> to vector<1x1x8x1xf32>
    tpu.vector_store %arg4[%c0_4, %c0_5, %c0_6, %c0_7], %30 {strides = array<i32>} : memref<1x1x8x1xf32, #tpu.memory_space<vmem>>, vector<1x1x8x1xf32>,
    %31 = arith.mulf %25, %25 : vector<8x256xf32>
    %cst_8 = arith.constant dense<0.000000e+00> : vector<8xf32>
    %32 = vector.multi_reduction <add>, %31, %cst_8 [1] : vector<8x256xf32> to vector<8xf32>
    %33 = vector.shape_cast %32 : vector<8xf32> to vector<8x1xf32>
    %c0_9 = arith.constant 0 : index
    %c0_10 = arith.constant 0 : index
    %c0_11 = arith.constant 0 : index
    %c0_12 = arith.constant 0 : index
    %34 = vector.load %arg5[%c0_9, %c0_10, %c0_11, %c0_12] : memref<1x1x8x1xf32, #tpu.memory_space<vmem>>, vector<1x1x8x1xf32>
    %35 = vector.shape_cast %34 : vector<1x1x8x1xf32> to vector<8x1xf32>
    %36 = vector.shape_cast %33 : vector<8x1xf32> to vector<1x1x8x1xf32>
    tpu.vector_store %arg5[%c0_9, %c0_10, %c0_11, %c0_12], %36 {strides = array<i32>} : memref<1x1x8x1xf32, #tpu.memory_space<vmem>>, vector<1x1x8x1xf32>,
    return
  }
  func.func @transform_0(%arg0: i32, %arg1: i32) -> (i32, i32, i32) {
    %c0_i32 = arith.constant 0 : i32
    %c0_i32_0 = arith.constant 0 : i32
    return %arg0, %c0_i32, %arg1 : i32, i32, i32
  }
  func.func @transform_1(%arg0: i32, %arg1: i32) -> (i32, i32) {
    %c0_i32 = arith.constant 0 : i32
    %c0_i32_0 = arith.constant 0 : i32
    %c0_i32_1 = arith.constant 0 : i32
    return %c0_i32, %c0_i32_0 : i32, i32
  }
  func.func @transform_2(%arg0: i32, %arg1: i32) -> (i32, i32, i32, i32) {
    %c0_i32 = arith.constant 0 : i32
    %c0_i32_0 = arith.constant 0 : i32
    %c0_i32_1 = arith.constant 0 : i32
    return %arg0, %arg1, %c0_i32, %c0_i32_0 : i32, i32, i32, i32
  }
  func.func @transform_3(%arg0: i32, %arg1: i32) -> (i32, i32, i32, i32) {
    %c0_i32 = arith.constant 0 : i32
    %c0_i32_0 = arith.constant 0 : i32
    %c0_i32_1 = arith.constant 0 : i32
    return %arg0, %arg1, %c0_i32, %c0_i32_0 : i32, i32, i32, i32
  }
}

</mosaic_0001>

<bundles_post_ra>
// kernel: tpu_custom_call.1
= control target key start
LH: loop header
LB: loop body
LE: loop exit
PB: predicated region body
PF: predicated region fallthrough
CT: control target
= control target key end

     0   :  { %9 = vsyncpa [#allocation3], 0  ;;  %s764_s0 = inlined_call_operand.hbm [shape: f32[2,4,256], index: 0, kind: input, shape index: {}]   ;;  %s765_s1 = inlined_call_operand.vmem [shape: f32[8,4], index: 1, kind: input, shape index: {}]   ;;  %s766_s2 = inlined_call_operand.vmem [shape: f32[2,1,8,1], index: 2, kind: output, shape index: {0}]   ;;  %s767_s3 = inlined_call_operand.vmem [shape: f32[2,1,8,1], index: 3, kind: output, shape index: {1}]  }
   0x1   :  { %11 = vsyncpa [#allocation3 + $0x1], 0  ;;  %s658_s12 = smov 0   ;;  %s660_s13 = smov 0  }
   0x2   :  { %s662_s14 = smov 0   ;;  %s664_s15 = smov 0  }
   0x3   :  { %s666_s16 = smov 0   ;;  %s668_s17 = smov 0  }
   0x4 LB: > { %s475_s18 = sadd.s32 4294967295, %s631_s17   ;;  %s29_s19 = sadd.s32 1, %s627_s16  ;;  %s631_s17 = sphi %s668_s17, %s17_s17   ;;  %s627_s16 = sphi %s666_s16, %s775_s16   ;;  %s623_s15 = sphi %s664_s15, %s774_s15   ;;  %s619_s14 = sphi %s662_s14, %s773_s14   ;;  %s615_s13 = sphi %s660_s13, %s772_s13   ;;  %s611_s12 = sphi %s658_s12, %s771_s12  }
   0x5   : > { %p31_p0 = scmp.ge.s32.totalorder %s29_s19, 2  ;;  %s38_s20 = sadd.s32 1, %s619_s14 }
   0x6   : > { %p45_p1 = scmp.ne.s32.totalorder %s619_s14, %s615_s13  ;;  %p46_p2 = scmp.eq.s32.totalorder %s631_s17, 0 }
   0x7   : > { %s777_s19 = smov (%p31_p0, %s29_s19), 0  ;;  %p51_p4 = scmp.ne.s32.totalorder %s615_s13, %s611_s12 }
   0x8   : > { %p694_p3 = por %p46_p2, %p45_p1  ;;  %s33_s22 = ssub.s32 %s627_s16, %s777_s19 }
   0x9   : > { %p52_p5 = scmp.eq.s32.totalorder %s475_s18, 0  ;;  %p36_p6 = scmp.eq.s32.totalorder %s33_s22, 0 }
   0xa   : > { %p495_p8 = scmp.lt.s32.totalorder %s631_s17, 2  ;;  %s155_s25 = sand.u32 1, %s619_s14  }
   0xb   : > { %p701_p7 = por %p52_p5, %p51_p4  ;;  %s488_s26 = sshll.u32 %s627_s16, 7 }
   0xc   : > { %s707_s24 = scalar_select %p36_p6, %s619_s14, %s38_s20  }
   0xd   : > { %s479_s27 = sshll.u32 %s155_s25, 3  ;;  %s167_s30 = scalar_lea.hbm %s764_s0, %s488_s26 }
   0xe   : > { %s159_s4 = scalar_lea.vmem [#allocation2], %s479_s27  ;;  %p716_p9 = pnand %p495_p8, %p694_p3 }
   0xf   : > { %s169_s5 = sshll.u32 %s159_s4, 4  ;;  %p482_p10 = scmp.ge.s32.totalorder %s631_s17, 1  ;;  %s170_s5 = int_to_ptr.vmem [resolvable:$true] %s169_s5 }
  0x10   : > { %p174_p11 = scmp.lt.s32.totalorder %s631_s17, 3  ;;  %s156_s7 = scalar_lea.sflag [#allocation3], %s155_s25 }
  0x11   : > { %p555_p12 = pneg %p716_p9  ;;  %s566_s8 = scalar_lea.vmem %s170_s5, 128 }
  0x12   : > { %p567_p13 = scmp.ne.s32.totalorder %s170_s5, %s566_s8  ;;  %s633_s9 = smov [#allocation2]  }
  0x13   : > { %s571_s10 = sshll.u32 %s633_s9, 4  ;;  %s572_s10 = int_to_ptr.vmem [resolvable:$false] %s571_s10 }
  0x14   : > { %p569_p0 = pnand %p567_p13, %p555_p12  ;;  %s573_s11 = scalar_lea.vmem %s572_s10, 256 }
  0x15   : > { %p574_p2 = scmp.lt.s32.totalorder %s170_s5, %s572_s10  ;;  %p575_p3 = scmp.lt.s32.totalorder %s573_s11, %s566_s8 }
  0x16   : > { %p570_p1 = pneg %p569_p0 }
  0x17   : > { %p576_p4 = por %p575_p3, %p574_p2 }
  0x19   : > { %p577_p5 = pnand %p576_p4, %p570_p1 }
  0x1b   : > { %580 = shalt.err (!%p577_p5)
}
  0x1c   : > { %494 = dma.hbm_to_vmem [thread:$0]  (!%p716_p9), %s167_s30, 128, %s170_s5, %s156_s7  }
  0x1d   : > { %p175_p6 = pnand %p482_p10, %p174_p11 }
  0x1e   : > { %s180_s12 = sand.u32 (!%p175_p6), 1, %s615_s13  }
  0x1f   : > { %178 = sbr.rel (%p175_p6) target bundleno = 319 (0x13f), region = 28  ;;  %s483_s18 = sshll.u32 (!%p175_p6), %s180_s12, 3 }
  0x20   : > { %s181_s20 = scalar_lea.sflag (!%p175_p6), [#allocation3], %s180_s12  ;;  %s184_s21 = scalar_lea.vmem (!%p175_p6), [#allocation2], %s483_s18 }
  0x24   : > { %606 = dma.done.wait (%p701_p7), %s181_s20, 128  }
  0x25   : > { %608 = vsyncadd (%p701_p7), %s181_s20, 4294967168  ;;  %v634_v0 = vmov 0   ;;  %v635_v1 = vmov 2   ;;  %v231_v2 = vld [vmem:[%s765_s1] sm:$0xff]  ;;  %v636_v3 = vmov 1   ;;  %v637_v4 = vmov 3  }
  0x26   : > { %548 = vset.pattern.permute.xlu0 %v634_v0  ;;  %550 = vset.pattern.permute.xlu1 %v635_v1  ;;  %v239_v5 = vlaneseq  ;;  %v232_v11 = vld [vmem:[%s184_s21] sm:$0xff]  ;;  %p217_p7 = scmp.lt.s32.totalorder %s623_s15, 1  ;;  %vm340_vm0 = vcmask 7168  }
  0x27   : > { %235 = vperm.xlu0 %548, %v231_v2   ;;  %286 = vperm.xlu1 %550, %v231_v2  }
  0x28   : > { %v240_v6 = vshrl.u32 %v239_v5, 7  ;;  %s779_s15 = smov (!%p217_p7, %s623_s15), 1 }
  0x29   : > { %s484_s23 = sshll.u32 %s779_s15, 3 }
  0x2a   : > { %v241_v7 = vsub.s32 0, %v240_v6  ;;  %v245_v8 = vsub.s32 4, %v240_v6  ;;  %v265_v9 = vsub.s32 1, %v240_v6  ;;  %v269_v10 = vsub.s32 5, %v240_v6  ;;  %s223_s28 = scalar_lea.vmem %s766_s2, %s484_s23  ;;  %s230_s4 = scalar_lea.vmem %s767_s3, %s484_s23 }
  0x2b   : > { %549 = vset.pattern.permute.xlu0 %v636_v3  ;;  %551 = vset.pattern.permute.xlu1 %v637_v4  ;;  %v291_v12 = vsub.s32 2, %v240_v6  ;;  %v295_v13 = vsub.s32 6, %v240_v6  ;;  %v317_v14 = vsub.s32 3, %v240_v6  ;;  %v321_v15 = vsub.s32 7, %v240_v6 }
  0x2c   : > { %260 = vperm.xlu0 %549, %v231_v2   ;;  %312 = vperm.xlu1 %551, %v231_v2   ;;  %v242_v16 = vrot.slane %v232_v11, %v241_v7  ;;  %v246_v17 = vrot.slane %v232_v11, %v245_v8  ;;  %v266_v18 = vrot.slane %v232_v11, %v265_v9 }
  0x2d   : > { %v270_v19 = vrot.slane %v232_v11, %v269_v10  ;;  %v292_v20 = vrot.slane %v232_v11, %v291_v12  ;;  %v296_v21 = vrot.slane %v232_v11, %v295_v13  ;;  %v318_v24 = vrot.slane %v232_v11, %v317_v14 }
  0x2e   : > { %v322_v25 = vrot.slane %v232_v11, %v321_v15  ;;  %v252_v26 = vrot.slane %v242_v16, %v241_v7  ;;  %v256_v27 = vrot.slane %v246_v17, %v241_v7  ;;  %v276_v28 = vrot.slane %v266_v18, %v265_v9 }
  0x2f   : > { %v280_v29 = vrot.slane %v270_v19, %v265_v9  ;;  %v302_v30 = vrot.slane %v292_v20, %v291_v12  ;;  %v306_v31 = vrot.slane %v296_v21, %v291_v12  ;;  %v328_v32 = vrot.slane %v318_v24, %v317_v14 }
  0x30   : > { %552 = vset.pattern.permute.xlu0 %v637_v4  ;;  %v332_v33 = vrot.slane %v322_v25, %v317_v14 }
  0xa2   : > { %v236_v22 = vpop.permute.xlu0 %235  ;;  %v287_v23 = vpop.permute.xlu1 %286 }
  0xa3   : > { %v257_v36 = vmul.f32 %v252_v26, %v236_v22  ;;  %v258_v37 = vmul.f32 %v256_v27, %v236_v22  ;;  %v307_v40 = vmul.f32 %v302_v30, %v287_v23  ;;  %v308_v41 = vmul.f32 %v306_v31, %v287_v23 }
  0xa7   : > { %v261_v34 = vpop.permute.xlu0 %260  ;;  %v313_v35 = vpop.permute.xlu1 %312 }
  0xa8   : > { %v281_v38 = vmul.f32 %v276_v28, %v261_v34  ;;  %v282_v39 = vmul.f32 %v280_v29, %v261_v34  ;;  %v333_v44 = vmul.f32 %v328_v32, %v313_v35  ;;  %v334_v45 = vmul.f32 %v332_v33, %v313_v35 }
  0xaa   : > { %v283_v42 = vadd.f32 %v281_v38, %v257_v36  ;;  %v284_v43 = vadd.f32 %v282_v39, %v258_v37 }
  0xac   : > { %v309_v46 = vadd.f32 %v307_v40, %v283_v42  ;;  %v310_v47 = vadd.f32 %v308_v41, %v284_v43 }
  0xae   : > { %v335_v48 = vadd.f32 %v333_v44, %v309_v46  ;;  %v336_v49 = vadd.f32 %v334_v45, %v310_v47 }
  0xb0   : > { %v337_v50 = vadd.f32 %v336_v49, %v335_v48  ;;  %v342_v51 = vmul.f32 %v335_v48, %v335_v48  ;;  %v343_v52 = vmul.f32 %v336_v49, %v336_v49 }
  0xb2   : > { %338 = vadd.xlane.f32.xlu1 %v337_v50  ;;  %v344_v53 = vadd.f32 %v343_v52, %v342_v51 }
  0xb4   : > { %345 = vadd.xlane.f32.xlu0 %v344_v53 }
 0x13b   : > { %v339_v54 = vpop.xlane.xlu1 %338 }
 0x13c   : > { %341 = vst.msk [vmem:[%s223_s28] sm:$0xff] %vm340_vm0, %v339_v54 }
 0x13d   : > { %v346_v55 = vpop.xlane.xlu0 %345 }
 0x13e   : > { %347 = vst.msk [vmem:[%s230_s4] sm:$0xff] %vm340_vm0, %v346_v55 }
 0x13f PF: > { %s17_s17 = sadd.s32 1, %s631_s17   ;;  %s771_s12 = smov %s615_s13 }
 0x140   : > { %p14_p8 = scmp.ge.s32.totalorder %s17_s17, 4   ;;  %s772_s13 = smov %s619_s14 }
 0x141   : > { %s773_s14 = smov %s707_s24  ;;  %s774_s15 = smov %s627_s16 }
 0x142   : > { %s775_s16 = smov %s777_s19  ;;  %16 = sbr.rel (!%p14_p8) target bundleno = 4 (0x4), region = 80 }
 0x147   :  { %393 = vsyncpa [#allocation3], 1 }
 0x148   :  { %395 = vsyncpa [#allocation3 + $0x1], 1 }

</bundles_post_ra>
